<compile_context>
chip_gen: v7x
topology: tpu7x:2x2x1
jax: 0.10.0
libtpu: 0.0.40
codegen_flags: <defaults>
</compile_context>

<pallas_src>
import math

import jax
import jax.numpy as jnp
from jax.experimental import pallas as pl
from jax.experimental.pallas import tpu as pltpu

IN_FEATURES = 28 * 28      # 784
H1, H2 = 32, 16
OUT_FEATURES = 10
OUT_PAD = 128              # lane-dense output block width (unmasked stores)
MAX_TILE_B = 1024          # fits comfortably in VMEM on v5e/v6e/v7x with bf16 I/O


def _round_up(n, m):
    return ((n + m - 1) // m) * m


def _cdiv(a, b):
    return -(-a // b)


# ----------------------------- Pallas kernel --------------------------------
def _cauchy_kan_mnist_kernel(
    x_ref,                       # (TILE_B, 784) bf16
    w1b_ref, w1c_ref,            # (784, 32) bf16, pre-transposed; cauchy pre-scaled
    lnw1_ref, lnb1_ref,          # (1, 32) f32
    w2b_ref, w2c_ref,            # (32, 16) f32, pre-transposed; cauchy pre-scaled
    lnw2_ref, lnb2_ref,          # (1, 16) f32
    w3b_ref, w3c_ref,            # (16, 128) f32, pre-transposed; zero-padded out cols
    out_ref,                     # (TILE_B, 128) bf16
):
    f32 = jnp.float32

    def silu(h):
        # x * sigmoid(x) with sigmoid(x) = 0.5*(tanh(x/2)+1): one EUP op per element
        # instead of exp + reciprocal.
        return h * (0.5 * (jnp.tanh(0.5 * h) + 1.0))

    def cauchy(h):
        # 1 / (1 + x^2); approximate reciprocal runs on the (otherwise free) EUP slot.
        return pl.reciprocal(1.0 + h * h, approx=True)

    def layer_norm(h, w, b):
        # PyTorch LayerNorm: biased variance over last dim, eps=1e-5.
        mean = jnp.mean(h, axis=-1, keepdims=True)
        c = h - mean
        var = jnp.mean(c * c, axis=-1, keepdims=True)
        return c * jax.lax.rsqrt(var + 1e-5) * w + b

    h = x_ref[...].astype(f32)

    # ---- layer 1 (784 -> 32): two accumulating bf16 MXU matmuls (no concat) ----
    h1 = jnp.dot(silu(h).astype(jnp.bfloat16), w1b_ref[...],
                 preferred_element_type=f32)
    h1 = h1 + jnp.dot(cauchy(h).astype(jnp.bfloat16), w1c_ref[...],
                      preferred_element_type=f32)
    h1 = layer_norm(h1, lnw1_ref[...], lnb1_ref[...])

    # ---- layer 2 (32 -> 16): tiny f32 matmuls ----
    h2 = (jnp.dot(silu(h1), w2b_ref[...], preferred_element_type=f32)
          + jnp.dot(cauchy(h1), w2c_ref[...], preferred_element_type=f32))
    h2 = layer_norm(h2, lnw2_ref[...], lnb2_ref[...])

    # ---- layer 3 (16 -> 10, output cols zero-padded to 128 lanes) ----
    out = (jnp.dot(silu(h2), w3b_ref[...], preferred_element_type=f32)
           + jnp.dot(cauchy(h2), w3c_ref[...], preferred_element_type=f32))
    out_ref[...] = out.astype(out_ref.dtype)


# ------------------------------ JAX wrapper ----------------------------------
def _prepare_weights(params):
    """One-time weight prep (transpose / pre-scale / pad) done in plain XLA."""
    f32, bf16 = jnp.float32, jnp.bfloat16

    # Layer 1: bf16 operands for native MXU matmuls (x is also fed as bf16).
    w1b = params["bw1"].T.astype(bf16)                              # (784, 32)
    w1c = (params["cw1"] * params["cs1"]).T.astype(bf16)            # (784, 32)

    # Layers 2/3 are tiny; keep them f32 (negligible HBM / MXU cost).
    w2b = params["bw2"].T.astype(f32)                               # (32, 16)
    w2c = (params["cw2"] * params["cs2"]).T.astype(f32)             # (32, 16)

    # Layer 3: pad output 10 -> 128 columns with zeros (lane-dense store).
    w3b = jnp.zeros((H2, OUT_PAD), f32).at[:, :OUT_FEATURES].set(params["bw3"].T)
    w3c = jnp.zeros((H2, OUT_PAD), f32).at[:, :OUT_FEATURES].set(
        (params["cw3"] * params["cs3"]).T)

    return (w1b, w1c,
            params["lnw1"], params["lnb1"],
            w2b, w2c,
            params["lnw2"], params["lnb2"],
            w3b, w3c)


@jax.jit
def cauchy_kan_mnist_forward(x, params):
    """x: any shape that flattens to (-1, 784). Returns (B, 10) float32."""
    # bf16 at the pallas_call boundary halves the dominant HBM read; if the
    # upstream pipeline already produces bf16 this astype is a no-op.
    x2d = x.reshape(-1, IN_FEATURES).astype(jnp.bfloat16)
    batch = x2d.shape[0]

    # Tile size: big enough to amortize per-step overhead, small enough that
    # batches larger than one tile always get >= 2 grid steps (v7x megacore).
    half = _cdiv(batch, 2)
    tile_b = min(MAX_TILE_B, _round_up(max(half, 8), 16))
    if tile_b >= batch:
        tile_b = batch            # single full-extent block; no ragged edge
    grid_b = _cdiv(batch, tile_b)
    b_out = grid_b * tile_b       # output over-allocated to a grid multiple

    weights = _prepare_weights(params)

    const = lambda i: (0, 0)   # weights stay VMEM-resident across grid steps
    # NOTE: constant-index inputs are not re-DMA'd; they still get the default
    # double buffer (~250 KB total here), which is negligible, so we do not use
    # pl.Buffered(1) for them.
    in_specs = [pl.BlockSpec((tile_b, IN_FEATURES), lambda i: (i, 0))]
    in_specs += [pl.BlockSpec(w.shape, const) for w in weights]

    out = pl.pallas_call(
        _cauchy_kan_mnist_kernel,
        out_shape=jax.ShapeDtypeStruct((b_out, OUT_PAD), jnp.bfloat16),
        grid=(grid_b,),
        in_specs=in_specs,
        out_specs=pl.BlockSpec((tile_b, OUT_PAD), lambda i: (i, 0)),
        compiler_params=pltpu.CompilerParams(
            dimension_semantics=("parallel",),
            vmem_limit_bytes=48 * 1024 * 1024),
    )(x2d, *weights)

    return out[:batch, :OUT_FEATURES].astype(jnp.float32)


# -------------------------- deterministic params ------------------------------
def _kaiming_uniform(key, out_f, in_f, a):
    # matches torch.nn.init.kaiming_uniform_ bound: sqrt(6 / ((1 + a^2) * fan_in))
    gain = math.sqrt(2.0 / (1.0 + a * a))
    bound = gain * math.sqrt(3.0 / in_f)
    return jax.random.uniform(key, (out_f, in_f), jnp.float32, -bound, bound)


def init_params(key):
    scale_noise, scale_base, scale_cauchy = 0.1, 1.0, 1.0
    dims = [(IN_FEATURES, H1), (H1, H2), (H2, OUT_FEATURES)]
    params = {}
    keys = jax.random.split(key, 9)
    for idx, (in_f, out_f) in enumerate(dims, start=1):
        k_bw, k_noise, k_cs = keys[(idx - 1) * 3:(idx - 1) * 3 + 3]
        params[f"bw{idx}"] = _kaiming_uniform(
            k_bw, out_f, in_f, math.sqrt(5) * scale_base)
        noise = (jax.random.uniform(k_noise, (out_f, in_f), jnp.float32) - 0.5) * scale_noise
        params[f"cw{idx}"] = 1.0 * noise  # standalone scaler enabled -> factor 1.0
        params[f"cs{idx}"] = _kaiming_uniform(
            k_cs, out_f, in_f, math.sqrt(5) * scale_cauchy)
    # LayerNorm params (PyTorch default init: weight=1, bias=0), kept as (1, F) rows
    params["lnw1"] = jnp.ones((1, H1), jnp.float32)
    params["lnb1"] = jnp.zeros((1, H1), jnp.float32)
    params["lnw2"] = jnp.ones((1, H2), jnp.float32)
    params["lnb2"] = jnp.zeros((1, H2), jnp.float32)
    return params


# ----------------------------- reference check --------------------------------
def _reference_forward(x, params):
    x2d = x.reshape(-1, IN_FEATURES).astype(jnp.float32)

    def kan(h, bw, cw, cs):
        base = (h * jax.nn.sigmoid(h)) @ bw.T
        cauchy = (1.0 / (1.0 + h * h)) @ (cw * cs).T
        return base + cauchy

    def ln(h, w, b):
        m = jnp.mean(h, -1, keepdims=True)
        v = jnp.mean((h - m) ** 2, -1, keepdims=True)
        return (h - m) / jnp.sqrt(v + 1e-5) * w + b

    h = kan(x2d, params["bw1"], params["cw1"], params["cs1"])
    h = ln(h, params["lnw1"], params["lnb1"])
    h = kan(h, params["bw2"], params["cw2"], params["cs2"])
    h = ln(h, params["lnw2"], params["lnb2"])
    h = kan(h, params["bw3"], params["cw3"], params["cs3"])
    return h


if __name__ == "__main__":
    key = jax.random.PRNGKey(0)
    k_param, k_x = jax.random.split(key)
    params = init_params(k_param)

    # small MNIST-like batch: 8 images of 28x28
    x = jax.random.normal(k_x, (8, 28, 28), jnp.float32)

    out = cauchy_kan_mnist_forward(x, params)
    out = jax.block_until_ready(out)

    ref = _reference_forward(x, params)
    assert out.shape == (8, 10), out.shape
    # Tolerance accounts for bf16 input/weight/output casts on the layer-1 path
    # and the EUP approximate reciprocal in the cauchy kernel.
    err = float(jnp.max(jnp.abs(out - ref)))
    assert jnp.allclose(out, ref, atol=6e-2, rtol=6e-2), err

    print("KERNEL_OK")
</pallas_src>

<mosaic_0001>
module attributes {stable_mosaic.version = 11 : i64} {
  func.func @_cauchy_kan_mnist_kernel(%arg0: i32, %arg1: memref<8x784xbf16, #tpu.memory_space<vmem>>, %arg2: memref<784x32xbf16, #tpu.memory_space<vmem>>, %arg3: memref<784x32xbf16, #tpu.memory_space<vmem>>, %arg4: memref<1x32xf32, #tpu.memory_space<vmem>>, %arg5: memref<1x32xf32, #tpu.memory_space<vmem>>, %arg6: memref<32x16xf32, #tpu.memory_space<vmem>>, %arg7: memref<32x16xf32, #tpu.memory_space<vmem>>, %arg8: memref<1x16xf32, #tpu.memory_space<vmem>>, %arg9: memref<1x16xf32, #tpu.memory_space<vmem>>, %arg10: memref<16x128xf32, #tpu.memory_space<vmem>>, %arg11: memref<16x128xf32, #tpu.memory_space<vmem>>, %arg12: memref<8x128xbf16, #tpu.memory_space<vmem>>) attributes {dimension_semantics = [#tpu.dimension_semantics<parallel>], iteration_bounds = array<i64: 1>, scalar_prefetch = 0 : i64, scratch_operands = 0 : i64, tpu.core_type = #tpu.core_type<tc>, window_params = [{transform_indices = @transform_0, window_bounds = array<i64: 8, 784>}, {pipeline_mode = #tpu.pipeline_mode<synchronous>, transform_indices = @transform_1, window_bounds = array<i64: 784, 32>}, {pipeline_mode = #tpu.pipeline_mode<synchronous>, transform_indices = @transform_2, window_bounds = array<i64: 784, 32>}, {pipeline_mode = #tpu.pipeline_mode<synchronous>, transform_indices = @transform_3, window_bounds = array<i64: 1, 32>}, {pipeline_mode = #tpu.pipeline_mode<synchronous>, transform_indices = @transform_4, window_bounds = array<i64: 1, 32>}, {pipeline_mode = #tpu.pipeline_mode<synchronous>, transform_indices = @transform_5, window_bounds = array<i64: 32, 16>}, {pipeline_mode = #tpu.pipeline_mode<synchronous>, transform_indices = @transform_6, window_bounds = array<i64: 32, 16>}, {pipeline_mode = #tpu.pipeline_mode<synchronous>, transform_indices = @transform_7, window_bounds = array<i64: 1, 16>}, {pipeline_mode = #tpu.pipeline_mode<synchronous>, transform_indices = @transform_8, window_bounds = array<i64: 1, 16>}, {pipeline_mode = #tpu.pipeline_mode<synchronous>, transform_indices = @transform_9, window_bounds = array<i64: 16, 128>}, {pipeline_mode = #tpu.pipeline_mode<synchronous>, transform_indices = @transform_10, window_bounds = array<i64: 16, 128>}, {transform_indices = @transform_11, window_bounds = array<i64: 8, 128>}]} {
    %c0 = arith.constant 0 : index
    %c0_0 = arith.constant 0 : index
    %0 = vector.load %arg1[%c0, %c0_0] : memref<8x784xbf16, #tpu.memory_space<vmem>>, vector<8x784xbf16>
    %1 = arith.extf %0 : vector<8x784xbf16> to vector<8x784xf32>
    %cst = arith.constant 5.000000e-01 : f32
    %2 = vector.broadcast %cst : f32 to vector<8x784xf32>
    %3 = arith.mulf %2, %1 : vector<8x784xf32>
    %4 = math.tanh %3 : vector<8x784xf32>
    %cst_1 = arith.constant 1.000000e+00 : f32
    %5 = vector.broadcast %cst_1 : f32 to vector<8x784xf32>
    %6 = arith.addf %4, %5 : vector<8x784xf32>
    %cst_2 = arith.constant 5.000000e-01 : f32
    %7 = vector.broadcast %cst_2 : f32 to vector<8x784xf32>
    %8 = arith.mulf %7, %6 : vector<8x784xf32>
    %9 = arith.mulf %1, %8 : vector<8x784xf32>
    %10 = arith.truncf %9 : vector<8x784xf32> to vector<8x784xbf16>
    %c0_3 = arith.constant 0 : index
    %c0_4 = arith.constant 0 : index
    %11 = vector.load %arg2[%c0_3, %c0_4] : memref<784x32xbf16, #tpu.memory_space<vmem>>, vector<784x32xbf16>
    %cst_5 = arith.constant dense<0.000000e+00> : vector<8x32xf32>
    %12 = tpu.matmul %10, %11, %cst_5 {dimension_numbers = #tpu.dot_dimension_numbers<[1], [0], [0], [1], [0, 0, 1, 1], [], []>} : vector<8x784xbf16>, vector<784x32xbf16>, vector<8x32xf32> -> vector<8x32xf32>
    %13 = arith.mulf %1, %1 : vector<8x784xf32>
    %cst_6 = arith.constant 1.000000e+00 : f32
    %14 = vector.broadcast %cst_6 : f32 to vector<8x784xf32>
    %15 = arith.addf %14, %13 : vector<8x784xf32>
    %16 = tpu.reciprocal %15 {approx = true} : vector<8x784xf32> -> vector<8x784xf32>
    %17 = arith.truncf %16 : vector<8x784xf32> to vector<8x784xbf16>
    %c0_7 = arith.constant 0 : index
    %c0_8 = arith.constant 0 : index
    %18 = vector.load %arg3[%c0_7, %c0_8] : memref<784x32xbf16, #tpu.memory_space<vmem>>, vector<784x32xbf16>
    %cst_9 = arith.constant dense<0.000000e+00> : vector<8x32xf32>
    %19 = tpu.matmul %17, %18, %cst_9 {dimension_numbers = #tpu.dot_dimension_numbers<[1], [0], [0], [1], [0, 0, 1, 1], [], []>} : vector<8x784xbf16>, vector<784x32xbf16>, vector<8x32xf32> -> vector<8x32xf32>
    %20 = arith.addf %12, %19 : vector<8x32xf32>
    %c0_10 = arith.constant 0 : index
    %c0_11 = arith.constant 0 : index
    %21 = vector.load %arg4[%c0_10, %c0_11] : memref<1x32xf32, #tpu.memory_space<vmem>>, vector<1x32xf32>
    %c0_12 = arith.constant 0 : index
    %c0_13 = arith.constant 0 : index
    %22 = vector.load %arg5[%c0_12, %c0_13] : memref<1x32xf32, #tpu.memory_space<vmem>>, vector<1x32xf32>
    %cst_14 = arith.constant dense<0.000000e+00> : vector<8xf32>
    %23 = vector.multi_reduction <add>, %20, %cst_14 [1] : vector<8x32xf32> to vector<8xf32>
    %24 = vector.shape_cast %23 : vector<8xf32> to vector<8x1xf32>
    %cst_15 = arith.constant 3.200000e+01 : f32
    %25 = vector.broadcast %cst_15 : f32 to vector<8x1xf32>
    %26 = arith.divf %24, %25 : vector<8x1xf32>
    %27 = vector.broadcast %26 : vector<8x1xf32> to vector<8x32xf32>
    %28 = arith.subf %20, %27 : vector<8x32xf32>
    %29 = arith.mulf %28, %28 : vector<8x32xf32>
    %cst_16 = arith.constant dense<0.000000e+00> : vector<8xf32>
    %30 = vector.multi_reduction <add>, %29, %cst_16 [1] : vector<8x32xf32> to vector<8xf32>
    %31 = vector.shape_cast %30 : vector<8xf32> to vector<8x1xf32>
    %cst_17 = arith.constant 3.200000e+01 : f32
    %32 = vector.broadcast %cst_17 : f32 to vector<8x1xf32>
    %33 = arith.divf %31, %32 : vector<8x1xf32>
    %cst_18 = arith.constant 9.99999974E-6 : f32
    %34 = vector.broadcast %cst_18 : f32 to vector<8x1xf32>
    %35 = arith.addf %33, %34 : vector<8x1xf32>
    %36 = math.rsqrt %35 : vector<8x1xf32>
    %37 = vector.broadcast %36 : vector<8x1xf32> to vector<8x32xf32>
    %38 = arith.mulf %28, %37 : vector<8x32xf32>
    %39 = vector.broadcast %21 : vector<1x32xf32> to vector<8x32xf32>
    %40 = arith.mulf %38, %39 : vector<8x32xf32>
    %41 = vector.broadcast %22 : vector<1x32xf32> to vector<8x32xf32>
    %42 = arith.addf %40, %41 : vector<8x32xf32>
    %cst_19 = arith.constant 5.000000e-01 : f32
    %43 = vector.broadcast %cst_19 : f32 to vector<8x32xf32>
    %44 = arith.mulf %43, %42 : vector<8x32xf32>
    %45 = math.tanh %44 : vector<8x32xf32>
    %cst_20 = arith.constant 1.000000e+00 : f32
    %46 = vector.broadcast %cst_20 : f32 to vector<8x32xf32>
    %47 = arith.addf %45, %46 : vector<8x32xf32>
    %cst_21 = arith.constant 5.000000e-01 : f32
    %48 = vector.broadcast %cst_21 : f32 to vector<8x32xf32>
    %49 = arith.mulf %48, %47 : vector<8x32xf32>
    %50 = arith.mulf %42, %49 : vector<8x32xf32>
    %c0_22 = arith.constant 0 : index
    %c0_23 = arith.constant 0 : index
    %51 = vector.load %arg6[%c0_22, %c0_23] : memref<32x16xf32, #tpu.memory_space<vmem>>, vector<32x16xf32>
    %cst_24 = arith.constant dense<0.000000e+00> : vector<8x16xf32>
    %52 = tpu.matmul %50, %51, %cst_24 {dimension_numbers = #tpu.dot_dimension_numbers<[1], [0], [0], [1], [0, 0, 1, 1], [], []>} : vector<8x32xf32>, vector<32x16xf32>, vector<8x16xf32> -> vector<8x16xf32>
    %53 = arith.mulf %42, %42 : vector<8x32xf32>
    %cst_25 = arith.constant 1.000000e+00 : f32
    %54 = vector.broadcast %cst_25 : f32 to vector<8x32xf32>
    %55 = arith.addf %54, %53 : vector<8x32xf32>
    %56 = tpu.reciprocal %55 {approx = true} : vector<8x32xf32> -> vector<8x32xf32>
    %c0_26 = arith.constant 0 : index
    %c0_27 = arith.constant 0 : index
    %57 = vector.load %arg7[%c0_26, %c0_27] : memref<32x16xf32, #tpu.memory_space<vmem>>, vector<32x16xf32>
    %cst_28 = arith.constant dense<0.000000e+00> : vector<8x16xf32>
    %58 = tpu.matmul %56, %57, %cst_28 {dimension_numbers = #tpu.dot_dimension_numbers<[1], [0], [0], [1], [0, 0, 1, 1], [], []>} : vector<8x32xf32>, vector<32x16xf32>, vector<8x16xf32> -> vector<8x16xf32>
    %59 = arith.addf %52, %58 : vector<8x16xf32>
    %c0_29 = arith.constant 0 : index
    %c0_30 = arith.constant 0 : index
    %60 = vector.load %arg8[%c0_29, %c0_30] : memref<1x16xf32, #tpu.memory_space<vmem>>, vector<1x16xf32>
    %c0_31 = arith.constant 0 : index
    %c0_32 = arith.constant 0 : index
    %61 = vector.load %arg9[%c0_31, %c0_32] : memref<1x16xf32, #tpu.memory_space<vmem>>, vector<1x16xf32>
    %cst_33 = arith.constant dense<0.000000e+00> : vector<8xf32>
    %62 = vector.multi_reduction <add>, %59, %cst_33 [1] : vector<8x16xf32> to vector<8xf32>
    %63 = vector.shape_cast %62 : vector<8xf32> to vector<8x1xf32>
    %cst_34 = arith.constant 1.600000e+01 : f32
    %64 = vector.broadcast %cst_34 : f32 to vector<8x1xf32>
    %65 = arith.divf %63, %64 : vector<8x1xf32>
    %66 = vector.broadcast %65 : vector<8x1xf32> to vector<8x16xf32>
    %67 = arith.subf %59, %66 : vector<8x16xf32>
    %68 = arith.mulf %67, %67 : vector<8x16xf32>
    %cst_35 = arith.constant dense<0.000000e+00> : vector<8xf32>
    %69 = vector.multi_reduction <add>, %68, %cst_35 [1] : vector<8x16xf32> to vector<8xf32>
    %70 = vector.shape_cast %69 : vector<8xf32> to vector<8x1xf32>
    %cst_36 = arith.constant 1.600000e+01 : f32
    %71 = vector.broadcast %cst_36 : f32 to vector<8x1xf32>
    %72 = arith.divf %70, %71 : vector<8x1xf32>
    %cst_37 = arith.constant 9.99999974E-6 : f32
    %73 = vector.broadcast %cst_37 : f32 to vector<8x1xf32>
    %74 = arith.addf %72, %73 : vector<8x1xf32>
    %75 = math.rsqrt %74 : vector<8x1xf32>
    %76 = vector.broadcast %75 : vector<8x1xf32> to vector<8x16xf32>
    %77 = arith.mulf %67, %76 : vector<8x16xf32>
    %78 = vector.broadcast %60 : vector<1x16xf32> to vector<8x16xf32>
    %79 = arith.mulf %77, %78 : vector<8x16xf32>
    %80 = vector.broadcast %61 : vector<1x16xf32> to vector<8x16xf32>
    %81 = arith.addf %79, %80 : vector<8x16xf32>
    %cst_38 = arith.constant 5.000000e-01 : f32
    %82 = vector.broadcast %cst_38 : f32 to vector<8x16xf32>
    %83 = arith.mulf %82, %81 : vector<8x16xf32>
    %84 = math.tanh %83 : vector<8x16xf32>
    %cst_39 = arith.constant 1.000000e+00 : f32
    %85 = vector.broadcast %cst_39 : f32 to vector<8x16xf32>
    %86 = arith.addf %84, %85 : vector<8x16xf32>
    %cst_40 = arith.constant 5.000000e-01 : f32
    %87 = vector.broadcast %cst_40 : f32 to vector<8x16xf32>
    %88 = arith.mulf %87, %86 : vector<8x16xf32>
    %89 = arith.mulf %81, %88 : vector<8x16xf32>
    %c0_41 = arith.constant 0 : index
    %c0_42 = arith.constant 0 : index
    %90 = vector.load %arg10[%c0_41, %c0_42] : memref<16x128xf32, #tpu.memory_space<vmem>>, vector<16x128xf32>
    %cst_43 = arith.constant dense<0.000000e+00> : vector<8x128xf32>
    %91 = tpu.matmul %89, %90, %cst_43 {dimension_numbers = #tpu.dot_dimension_numbers<[1], [0], [0], [1], [0, 0, 1, 1], [], []>} : vector<8x16xf32>, vector<16x128xf32>, vector<8x128xf32> -> vector<8x128xf32>
    %92 = arith.mulf %81, %81 : vector<8x16xf32>
    %cst_44 = arith.constant 1.000000e+00 : f32
    %93 = vector.broadcast %cst_44 : f32 to vector<8x16xf32>
    %94 = arith.addf %93, %92 : vector<8x16xf32>
    %95 = tpu.reciprocal %94 {approx = true} : vector<8x16xf32> -> vector<8x16xf32>
    %c0_45 = arith.constant 0 : index
    %c0_46 = arith.constant 0 : index
    %96 = vector.load %arg11[%c0_45, %c0_46] : memref<16x128xf32, #tpu.memory_space<vmem>>, vector<16x128xf32>
    %cst_47 = arith.constant dense<0.000000e+00> : vector<8x128xf32>
    %97 = tpu.matmul %95, %96, %cst_47 {dimension_numbers = #tpu.dot_dimension_numbers<[1], [0], [0], [1], [0, 0, 1, 1], [], []>} : vector<8x16xf32>, vector<16x128xf32>, vector<8x128xf32> -> vector<8x128xf32>
    %98 = arith.addf %91, %97 : vector<8x128xf32>
    %99 = arith.truncf %98 : vector<8x128xf32> to vector<8x128xbf16>
    %c0_48 = arith.constant 0 : index
    %c0_49 = arith.constant 0 : index
    %100 = vector.load %arg12[%c0_48, %c0_49] : memref<8x128xbf16, #tpu.memory_space<vmem>>, vector<8x128xbf16>
    tpu.vector_store %arg12[%c0_48, %c0_49], %99 {strides = array<i32>} : memref<8x128xbf16, #tpu.memory_space<vmem>>, vector<8x128xbf16>,
    return
  }
  func.func @transform_0(%arg0: i32) -> (i32, i32) {
    %c0_i32 = arith.constant 0 : i32
    %c0_i32_0 = arith.constant 0 : i32
    return %arg0, %c0_i32 : i32, i32
  }
  func.func @transform_1(%arg0: i32) -> (i32, i32) {
    %c0_i32 = arith.constant 0 : i32
    %c0_i32_0 = arith.constant 0 : i32
    %c0_i32_1 = arith.constant 0 : i32
    return %c0_i32, %c0_i32_0 : i32, i32
  }
  func.func @transform_2(%arg0: i32) -> (i32, i32) {
    %c0_i32 = arith.constant 0 : i32
    %c0_i32_0 = arith.constant 0 : i32
    %c0_i32_1 = arith.constant 0 : i32
    return %c0_i32, %c0_i32_0 : i32, i32
  }
  func.func @transform_3(%arg0: i32) -> (i32, i32) {
    %c0_i32 = arith.constant 0 : i32
    %c0_i32_0 = arith.constant 0 : i32
    %c0_i32_1 = arith.constant 0 : i32
    return %c0_i32, %c0_i32_0 : i32, i32
  }
  func.func @transform_4(%arg0: i32) -> (i32, i32) {
    %c0_i32 = arith.constant 0 : i32
    %c0_i32_0 = arith.constant 0 : i32
    %c0_i32_1 = arith.constant 0 : i32
    return %c0_i32, %c0_i32_0 : i32, i32
  }
  func.func @transform_5(%arg0: i32) -> (i32, i32) {
    %c0_i32 = arith.constant 0 : i32
    %c0_i32_0 = arith.constant 0 : i32
    %c0_i32_1 = arith.constant 0 : i32
    return %c0_i32, %c0_i32_0 : i32, i32
  }
  func.func @transform_6(%arg0: i32) -> (i32, i32) {
    %c0_i32 = arith.constant 0 : i32
    %c0_i32_0 = arith.constant 0 : i32
    %c0_i32_1 = arith.constant 0 : i32
    return %c0_i32, %c0_i32_0 : i32, i32
  }
  func.func @transform_7(%arg0: i32) -> (i32, i32) {
    %c0_i32 = arith.constant 0 : i32
    %c0_i32_0 = arith.constant 0 : i32
    %c0_i32_1 = arith.constant 0 : i32
    return %c0_i32, %c0_i32_0 : i32, i32
  }
  func.func @transform_8(%arg0: i32) -> (i32, i32) {
    %c0_i32 = arith.constant 0 : i32
    %c0_i32_0 = arith.constant 0 : i32
    %c0_i32_1 = arith.constant 0 : i32
    return %c0_i32, %c0_i32_0 : i32, i32
  }
  func.func @transform_9(%arg0: i32) -> (i32, i32) {
    %c0_i32 = arith.constant 0 : i32
    %c0_i32_0 = arith.constant 0 : i32
    %c0_i32_1 = arith.constant 0 : i32
    return %c0_i32, %c0_i32_0 : i32, i32
  }
  func.func @transform_10(%arg0: i32) -> (i32, i32) {
    %c0_i32 = arith.constant 0 : i32
    %c0_i32_0 = arith.constant 0 : i32
    %c0_i32_1 = arith.constant 0 : i32
    return %c0_i32, %c0_i32_0 : i32, i32
  }
  func.func @transform_11(%arg0: i32) -> (i32, i32) {
    %c0_i32 = arith.constant 0 : i32
    %c0_i32_0 = arith.constant 0 : i32
    return %arg0, %c0_i32 : i32, i32
  }
}

</mosaic_0001>

<bundles_post_ra>
// kernel: mul.3
= control target key start
LH: loop header
LB: loop body
LE: loop exit
PB: predicated region body
PF: predicated region fallthrough
CT: control target
= control target key end

     0   :  { %s659_s0 = inlined_call_operand.vmem [shape: f32[32,784], index: 0, kind: input, shape index: {}]   ;;  %s660_s1 = inlined_call_operand.vmem [shape: f32[32,784], index: 1, kind: input, shape index: {}]   ;;  %s661_s2 = inlined_call_operand.vmem [shape: bf16[32,784], index: 2, kind: output, shape index: {}]  }
   0x1   :  { %v3_v0 = vld [vmem:[%s659_s0] sm:$0xff]  ;;  %v344_v2 = vld [vmem:[%s659_s0 + $0x38] sm:$0xff]  ;;  %v346_v5 = vld [vmem:[%s659_s0 + $0x70] sm:$0xff] }
   0x2   :  { %v4_v1 = vld [vmem:[%s660_s1] sm:$0xff]  ;;  %v345_v4 = vld [vmem:[%s660_s1 + $0x38] sm:$0xff]  ;;  %v347_v6 = vld [vmem:[%s660_s1 + $0x70] sm:$0xff] }
   0x3   :  { %v7_v3 = vmul.f32 %v4_v1, %v3_v0  ;;  %v15_v7 = vmul.f32 %v345_v4, %v344_v2  ;;  %v24_v8 = vmul.f32 %v347_v6, %v346_v5  ;;  %v348_v9 = vld [vmem:[%s659_s0 + $0xa8] sm:$0xff]  ;;  %v354_v14 = vld [vmem:[%s659_s0 + $0x40] sm:$0xff]  ;;  %v358_v18 = vld [vmem:[%s659_s0 + $0x78] sm:$0xff] }
   0x4   :  { %v349_v10 = vld [vmem:[%s660_s1 + $0xa8] sm:$0xff]  ;;  %v355_v15 = vld [vmem:[%s660_s1 + $0x40] sm:$0xff]  ;;  %v359_v19 = vld [vmem:[%s660_s1 + $0x78] sm:$0xff] }
   0x5   :  { %v350_v11 = vld [vmem:[%s659_s0 + $0x8] sm:$0xff]  ;;  %v33_v12 = vmul.f32 %v349_v10, %v348_v9  ;;  %v56_v17 = vmul.f32 %v355_v15, %v354_v14  ;;  %v362_v20 = vld [vmem:[%s659_s0 + $0xb0] sm:$0xff]  ;;  %v70_v21 = vmul.f32 %v359_v19, %v358_v18  ;;  %v370_v31 = vld [vmem:[%s659_s0 + $0x80] sm:$0xff] }
   0x6   :  { %v351_v13 = vld [vmem:[%s660_s1 + $0x8] sm:$0xff]  ;;  %v363_v22 = vld [vmem:[%s660_s1 + $0xb0] sm:$0xff]  ;;  %v371_v34 = vld [vmem:[%s660_s1 + $0x80] sm:$0xff] }
   0x7   :  { %v42_v16 = vmul.f32 %v351_v13, %v350_v11  ;;  %v366_v23 = vld [vmem:[%s659_s0 + $0x10] sm:$0xff]  ;;  %v62_v26 = vpack.c.bf16 %v56_v17, %v15_v7  ;;  %v84_v27 = vmul.f32 %v363_v22, %v362_v20  ;;  %v368_v29 = vld [vmem:[%s659_s0 + $0x48] sm:$0xff]  ;;  %v76_v32 = vpack.c.bf16 %v70_v21, %v24_v8  ;;  %v372_v35 = vld [vmem:[%s659_s0 + $0xb8] sm:$0xff] }
   0x8   :  { %v367_v24 = vld [vmem:[%s660_s1 + $0x10] sm:$0xff]  ;;  %v369_v30 = vld [vmem:[%s660_s1 + $0x48] sm:$0xff]  ;;  %v373_v36 = vld [vmem:[%s660_s1 + $0xb8] sm:$0xff]  ;;  %v116_v38 = vmul.f32 %v371_v34, %v370_v31  ;;  %v427_v31 = vmov 0.0  }
   0x9   :  { %v48_v25 = vpack.c.bf16 %v42_v16, %v7_v3  ;;  %v98_v28 = vmul.f32 %v367_v24, %v366_v23  ;;  %v107_v33 = vmul.f32 %v369_v30, %v368_v29  ;;  %357 = vst [vmem:[%s661_s2 + $0x1c] sm:$0xff] %v62_v26  ;;  %v90_v37 = vpack.c.bf16 %v84_v27, %v33_v12  ;;  %v374_v40 = vld [vmem:[%s659_s0 + $0x18] sm:$0xff]  ;;  %v378_v42 = vld [vmem:[%s659_s0 + $0x50] sm:$0xff]  ;;  %v382_v45 = vld [vmem:[%s659_s0 + $0x88] sm:$0xff] }
   0xa   :  { %v125_v39 = vmul.f32 %v373_v36, %v372_v35  ;;  %v375_v41 = vld [vmem:[%s660_s1 + $0x18] sm:$0xff]  ;;  %361 = vst [vmem:[%s661_s2 + $0x38] sm:$0xff] %v76_v32  ;;  %v379_v44 = vld [vmem:[%s660_s1 + $0x50] sm:$0xff]  ;;  %v383_v46 = vld [vmem:[%s660_s1 + $0x88] sm:$0xff] }
   0xb   :  { %353 = vst [vmem:[%s661_s2] sm:$0xff] %v48_v25  ;;  %v134_v43 = vmul.f32 %v375_v41, %v374_v40  ;;  %365 = vst [vmem:[%s661_s2 + $0x54] sm:$0xff] %v90_v37  ;;  %v148_v47 = vmul.f32 %v379_v44, %v378_v42  ;;  %v162_v48 = vmul.f32 %v383_v46, %v382_v45  ;;  %v386_v49 = vld [vmem:[%s659_s0 + $0xc0] sm:$0xff]  ;;  %v392_v55 = vld [vmem:[%s659_s0 + $0x58] sm:$0xff] }
   0xc   :  { %v387_v50 = vld [vmem:[%s660_s1 + $0xc0] sm:$0xff]  ;;  %v393_v56 = vld [vmem:[%s660_s1 + $0x58] sm:$0xff]  ;;  %v394_v61 = vld [vmem:[%s659_s0 + $0x90] sm:$0xff] }
   0xd   :  { %v390_v51 = vld [vmem:[%s659_s0 + $0x20] sm:$0xff]  ;;  %v140_v52 = vpack.c.bf16 %v134_v43, %v98_v28  ;;  %v176_v53 = vmul.f32 %v387_v50, %v386_v49  ;;  %v154_v57 = vpack.c.bf16 %v148_v47, %v107_v33  ;;  %v168_v58 = vpack.c.bf16 %v162_v48, %v116_v38  ;;  %v395_v62 = vld [vmem:[%s660_s1 + $0x90] sm:$0xff]  ;;  %v396_v63 = vld [vmem:[%s659_s0 + $0xc8] sm:$0xff] }
   0xe   :  { %v391_v54 = vld [vmem:[%s660_s1 + $0x20] sm:$0xff]  ;;  %v199_v60 = vmul.f32 %v393_v56, %v392_v55  ;;  %v208_v1 = vmul.f32 %v395_v62, %v394_v61  ;;  %v397_v2 = vld [vmem:[%s660_s1 + $0xc8] sm:$0xff]  ;;  %v406_v9 = vld [vmem:[%s659_s0 + $0x98] sm:$0xff] }
   0xf   :  { %v190_v59 = vmul.f32 %v391_v54, %v390_v51  ;;  %377 = vst [vmem:[%s661_s2 + $0x8] sm:$0xff] %v140_v52  ;;  %v182_v0 = vpack.c.bf16 %v176_v53, %v125_v39  ;;  %v398_v3 = vld [vmem:[%s659_s0 + $0x28] sm:$0xff]  ;;  %381 = vst [vmem:[%s661_s2 + $0x24] sm:$0xff] %v154_v57  ;;  %v217_v5 = vmul.f32 %v397_v2, %v396_v63  ;;  %v402_v7 = vld [vmem:[%s659_s0 + $0x60] sm:$0xff] }
  0x10   :  { %v399_v4 = vld [vmem:[%s660_s1 + $0x28] sm:$0xff]  ;;  %385 = vst [vmem:[%s661_s2 + $0x40] sm:$0xff] %v168_v58  ;;  %v403_v8 = vld [vmem:[%s660_s1 + $0x60] sm:$0xff]  ;;  %v407_v11 = vld [vmem:[%s660_s1 + $0x98] sm:$0xff] }
  0x11   :  { %v226_v6 = vmul.f32 %v399_v4, %v398_v3  ;;  %389 = vst [vmem:[%s661_s2 + $0x5c] sm:$0xff] %v182_v0  ;;  %v240_v10 = vmul.f32 %v403_v8, %v402_v7  ;;  %v410_v12 = vld [vmem:[%s659_s0 + $0xd0] sm:$0xff]  ;;  %v254_v15 = vmul.f32 %v407_v11, %v406_v9  ;;  %v417_v19 = vld [vmem:[%s659_s0 + $0x68] sm:$0xff]  ;;  %v420_v23 = vld [vmem:[%s659_s0 + $0xa0] sm:$0xff] }
  0x12   :  { %v411_v13 = vld [vmem:[%s660_s1 + $0xd0] sm:$0xff]  ;;  %v418_v22 = vld [vmem:[%s660_s1 + $0x68] sm:$0xff]  ;;  %v421_v24 = vld [vmem:[%s660_s1 + $0xa0] sm:$0xff] }
  0x13   :  { %v232_v14 = vpack.c.bf16 %v226_v6, %v190_v59  ;;  %v268_v16 = vmul.f32 %v411_v13, %v410_v12  ;;  %v414_v17 = vld [vmem:[%s659_s0 + $0x30] sm:$0xff]  ;;  %v246_v20 = vpack.c.bf16 %v240_v10, %v199_v60  ;;  %v260_v25 = vpack.c.bf16 %v254_v15, %v208_v1  ;;  %v423_v29 = vld [vmem:[%s659_s0 + $0xd8] sm:$0xff] }
  0x14   :  { %v415_v18 = vld [vmem:[%s660_s1 + $0x30] sm:$0xff]  ;;  %v293_v27 = vmul.f32 %v418_v22, %v417_v19  ;;  %v304_v28 = vmul.f32 %v421_v24, %v420_v23  ;;  %v424_v30 = vld [vmem:[%s660_s1 + $0xd8] sm:$0xff] }
  0x15   :  { %v282_v21 = vmul.f32 %v415_v18, %v414_v17  ;;  %401 = vst [vmem:[%s661_s2 + $0x10] sm:$0xff] %v232_v14  ;;  %v274_v26 = vpack.c.bf16 %v268_v16, %v217_v5  ;;  %405 = vst [vmem:[%s661_s2 + $0x2c] sm:$0xff] %v246_v20  ;;  %v315_v33 = vmul.f32 %v424_v30, %v423_v29 }
  0x16   :  { %409 = vst [vmem:[%s661_s2 + $0x48] sm:$0xff] %v260_v25  ;;  %v296_v34 = vpack.c.bf16 %v427_v31, %v293_v27  ;;  %v307_v35 = vpack.c.bf16 %v427_v31, %v304_v28 }
  0x17   :  { %v285_v32 = vpack.c.bf16 %v427_v31, %v282_v21  ;;  %413 = vst [vmem:[%s661_s2 + $0x64] sm:$0xff] %v274_v26  ;;  %v318_v36 = vpack.c.bf16 %v427_v31, %v315_v33 }
  0x18   :  { %419 = vst [vmem:[%s661_s2 + $0x34] sm:$0xf] %v296_v34  ;;  %422 = vst [vmem:[%s661_s2 + $0x50] sm:$0xf] %v307_v35 }
  0x19   :  { %416 = vst [vmem:[%s661_s2 + $0x18] sm:$0xf] %v285_v32  ;;  %425 = vst [vmem:[%s661_s2 + $0x6c] sm:$0xf] %v318_v36 }

// kernel: mul.4
= control target key start
LH: loop header
LB: loop body
LE: loop exit
PB: predicated region body
PF: predicated region fallthrough
CT: control target
= control target key end

     0   :  { %s56_s0 = inlined_call_operand.vmem [shape: f32[16,32], index: 0, kind: input, shape index: {}]   ;;  %s57_s1 = inlined_call_operand.vmem [shape: f32[16,32], index: 1, kind: input, shape index: {}]   ;;  %s58_s2 = inlined_call_operand.vmem [shape: f32[16,32], index: 2, kind: output, shape index: {}]  }
   0x1   :  { %v3_v0 = vld [vmem:[%s56_s0] sm:$0xff]  ;;  %v20_v2 = vld [vmem:[%s56_s0 + $0x8] sm:$0xff] }
   0x2   :  { %v4_v1 = vld [vmem:[%s57_s1] sm:$0xff]  ;;  %v21_v4 = vld [vmem:[%s57_s1 + $0x8] sm:$0xff] }
   0x3   :  { %v7_v3 = vmul.f32 %v4_v1, %v3_v0  ;;  %v16_v5 = vmul.f32 %v21_v4, %v20_v2 }
   0x5   :  { %9 = vst [vmem:[%s58_s2] sm:$0xff] %v7_v3  ;;  %22 = vst [vmem:[%s58_s2 + $0x8] sm:$0xff] %v16_v5 }

// kernel: cauchy_kan_mnist_forward.1
= control target key start
LH: loop header
LB: loop body
LE: loop exit
PB: predicated region body
PF: predicated region fallthrough
CT: control target
= control target key end

     0   :  { %v2097_v41 = vmov 0.0   ;;  %vm2098_vm0 = vmmov 0   ;;  %vm610_vm1 = vcmask 130048   ;;  %vm1233_vm2 = vcmask 261120   ;;  %s2583_s2 = inlined_call_operand.vmem [shape: bf16[784,32], index: 2, kind: input, shape index: {}]   ;;  %s2584_s0 = inlined_call_operand.vmem [shape: bf16[8,784], index: 0, kind: input, shape index: {}]   ;;  %s2585_s1 = inlined_call_operand.vmem [shape: bf16[784,32], index: 1, kind: input, shape index: {}]   ;;  %s2586_s6 = inlined_call_operand.vmem [shape: f32[32,16], index: 6, kind: input, shape index: {}]   ;;  %s2587_s3 = inlined_call_operand.vmem [shape: f32[1,32], index: 3, kind: input, shape index: {}]   ;;  %s2588_s4 = inlined_call_operand.vmem [shape: f32[1,32], index: 4, kind: input, shape index: {}]   ;;  %s2589_s5 = inlined_call_operand.vmem [shape: f32[32,16], index: 5, kind: input, shape index: {}]   ;;  %s2590_s10 = inlined_call_operand.vmem [shape: f32[16,128], index: 10, kind: input, shape index: {}]   ;;  %s2591_s7 = inlined_call_operand.vmem [shape: f32[1,16], index: 7, kind: input, shape index: {}]   ;;  %s2592_s8 = inlined_call_operand.vmem [shape: f32[1,16], index: 8, kind: input, shape index: {}]   ;;  %s2593_s9 = inlined_call_operand.vmem [shape: f32[16,128], index: 9, kind: input, shape index: {}]   ;;  %s2594_s11 = inlined_call_operand.vmem [shape: bf16[8,128], index: 11, kind: output, shape index: {}]  }
   0x1   :  { %v1959_v0 = vld [vmem:[%s2583_s2 + $0x40] sm:$0xff]   ;;  %v1963_v4 = vld [vmem:[%s2583_s2 + $0x48] sm:$0xff]   ;;  %v1967_v8 = vld [vmem:[%s2583_s2 + $0x50] sm:$0xff]  }
   0x2   :  { %v1960_v1 = vld [vmem:[%s2583_s2 + $0xc0] sm:$0xff]   ;;  %1726 = vmatprep.subr.bf16.mxu0 %v1959_v0  ;;  %v1964_v5 = vld [vmem:[%s2583_s2 + $0xc8] sm:$0xff]   ;;  %v1968_v9 = vld [vmem:[%s2583_s2 + $0xd0] sm:$0xff]  }
   0x3   :  { %v1961_v2 = vld [vmem:[%s2583_s2] sm:$0xff]   ;;  %1748 = vmatprep.subr.bf16.mxu1 %v1960_v1  ;;  %v1965_v6 = vld [vmem:[%s2583_s2 + $0x8] sm:$0xff]   ;;  %v1969_v10 = vld [vmem:[%s2583_s2 + $0x10] sm:$0xff]  }
   0x4   :  { %v1962_v3 = vld [vmem:[%s2583_s2 + $0x80] sm:$0xff]   ;;  %1727 = vmatpush3.bf16.msra.mxu0 %v1961_v2  ;;  %v1966_v7 = vld [vmem:[%s2583_s2 + $0x88] sm:$0xff]   ;;  %v1970_v11 = vld [vmem:[%s2583_s2 + $0x90] sm:$0xff]  }
   0x5   :  { %1749 = vmatpush3.bf16.msra.mxu1 %v1962_v3  ;;  %1728 = vmatprep.subr.bf16.mxu0 %v1963_v4  ;;  %v1971_v12 = vld [vmem:[%s2583_s2 + $0x58] sm:$0xff]   ;;  %v1975_v16 = vld [vmem:[%s2583_s2 + $0x60] sm:$0xff]   ;;  %v1979_v20 = vld [vmem:[%s2583_s2 + $0x68] sm:$0xff]  }
   0x6   :  { %1750 = vmatprep.subr.bf16.mxu1 %v1964_v5  ;;  %v1972_v13 = vld [vmem:[%s2583_s2 + $0xd8] sm:$0xff]   ;;  %v1976_v17 = vld [vmem:[%s2583_s2 + $0xe0] sm:$0xff]   ;;  %v1980_v21 = vld [vmem:[%s2583_s2 + $0xe8] sm:$0xff]  }
   0x7   :  { %v1973_v14 = vld [vmem:[%s2583_s2 + $0x18] sm:$0xff]   ;;  %v1977_v18 = vld [vmem:[%s2583_s2 + $0x20] sm:$0xff]   ;;  %v1981_v22 = vld [vmem:[%s2583_s2 + $0x28] sm:$0xff]  }
   0x8   :  { %1729 = vmatpush3.bf16.msra.mxu0 %v1965_v6  ;;  %v1974_v15 = vld [vmem:[%s2583_s2 + $0x98] sm:$0xff]   ;;  %v1978_v19 = vld [vmem:[%s2583_s2 + $0xa0] sm:$0xff]   ;;  %v1982_v23 = vld [vmem:[%s2583_s2 + $0xa8] sm:$0xff]  }
   0x9   :  { %1751 = vmatpush3.bf16.msra.mxu1 %v1966_v7  ;;  %1730 = vmatprep.subr.bf16.mxu0 %v1967_v8  ;;  %v1983_v24 = vld [vmem:[%s2583_s2 + $0x70] sm:$0xff]   ;;  %v1987_v28 = vld [vmem:[%s2583_s2 + $0x78] sm:$0xff]   ;;  %v39_v32 = vld [vmem:[%s2584_s0] sm:$0xff] }
   0xa   :  { %1752 = vmatprep.subr.bf16.mxu1 %v1968_v9  ;;  %v1984_v25 = vld [vmem:[%s2583_s2 + $0xf0] sm:$0xff]   ;;  %v1988_v29 = vld [vmem:[%s2583_s2 + $0xf8] sm:$0xff]   ;;  %v40_v34 = vld [vmem:[%s2584_s0 + $0x8] sm:$0xff]  ;;  %v2265_v35 = vunpack.c.l.bf16 %v39_v32  ;;  %v44_v36 = vunpack.c.h.bf16 %v39_v32 }
   0xb   :  { %v1985_v26 = vld [vmem:[%s2583_s2 + $0x30] sm:$0xff]   ;;  %v1989_v30 = vld [vmem:[%s2583_s2 + $0x38] sm:$0xff]   ;;  %v2267_v37 = vunpack.c.l.bf16 %v40_v34  ;;  %v1991_v38 = vld [vmem:[%s2583_s2 + $0x140] sm:$0xff]   ;;  %v2274_v40 = vunpack.c.h.bf16 %v40_v34 }
   0xc   :  { %1731 = vmatpush3.bf16.msra.mxu0 %v1969_v10  ;;  %v1986_v27 = vld [vmem:[%s2583_s2 + $0xb0] sm:$0xff]   ;;  %v1990_v31 = vld [vmem:[%s2583_s2 + $0xb8] sm:$0xff]   ;;  %v191_v42 = vmul.f32 %v44_v36, %v44_v36  ;;  %v190_v43 = vmul.f32 %v2265_v35, %v2265_v35  ;;  %v51_v46 = vmul.f32 0.5, %v44_v36  ;;  %v1992_v58 = vld [vmem:[%s2583_s2 + $0x100] sm:$0xff]  }
   0xd   :  { %1753 = vmatpush3.bf16.msra.mxu1 %v1970_v11  ;;  %1732 = vmatprep.subr.bf16.mxu0 %v1971_v12  ;;  %v42_v33 = vld [vmem:[%s2584_s0 + $0x18] sm:$0xf]  ;;  %v192_v44 = vmul.f32 %v2267_v37, %v2267_v37  ;;  %v193_v45 = vmul.f32 %v2274_v40, %v2274_v40  ;;  %v1993_v61 = vld [vmem:[%s2583_s2 + $0x180] sm:$0xff]   ;;  %v1994_v0 = vld [vmem:[%s2583_s2 + $0x148] sm:$0xff]   ;;  %v53_v4 = vmul.f32 0.5, %v2274_v40 }
   0xe   :  { %1754 = vmatprep.subr.bf16.mxu1 %v1972_v13  ;;  %v2272_v39 = vunpack.c.l.bf16 %v42_v33  ;;  %v198_v47 = vadd.f32 1.0, %v191_v42  ;;  %v197_v48 = vadd.f32 1.0, %v190_v43  ;;  %2057 = vtanh.f32 %v51_v46  ;;  %v1996_v2 = vld [vmem:[%s2585_s1 + $0x40] sm:$0xff]   ;;  %v1995_v5 = vld [vmem:[%s2583_s2 + $0x108] sm:$0xff]   ;;  %v1997_v7 = vld [vmem:[%s2583_s2 + $0x150] sm:$0xff]  }
   0xf   :  { %v200_v49 = vadd.f32 1.0, %v193_v45  ;;  %v199_v50 = vadd.f32 1.0, %v192_v44  ;;  %v1998_v9 = vld [vmem:[%s2585_s1] sm:$0xff]   ;;  %v1999_v11 = vld [vmem:[%s2583_s2 + $0x110] sm:$0xff]   ;;  %v2001_v12 = vld [vmem:[%s2583_s2 + $0x158] sm:$0xff]  }
  0x10   :  { %1733 = vmatpush3.bf16.msra.mxu0 %v1973_v14  ;;  %v196_v51 = vmul.f32 %v2272_v39, %v2272_v39  ;;  %2059 = vrcp.f32 %v198_v47  ;;  %v2000_v13 = vld [vmem:[%s2585_s1 + $0x48] sm:$0xff]   ;;  %v2008_v32 = vld [vmem:[%s2585_s1 + $0x58] sm:$0xff]   ;;  %v2012_v42 = vld [vmem:[%s2585_s1 + $0x60] sm:$0xff]  }
  0x11   :  { %1755 = vmatpush3.bf16.msra.mxu1 %v1974_v15  ;;  %1734 = vmatprep.subr.bf16.mxu0 %v1975_v16  ;;  %2061 = vrcp.f32 %v200_v49  ;;  %v2002_v15 = vld [vmem:[%s2585_s1 + $0x8] sm:$0xff]   ;;  %v41_v16 = vld [vmem:[%s2584_s0 + $0x10] sm:$0xff]  ;;  %v2010_v33 = vld [vmem:[%s2585_s1 + $0x18] sm:$0xff]  }
  0x12   :  { %1756 = vmatprep.subr.bf16.mxu1 %v1976_v17  ;;  %2063 = vrcp.f32 %v197_v48  ;;  %v203_v52 = vadd.f32 1.0, %v196_v51  ;;  %v50_v17 = vmul.f32 0.5, %v2265_v35  ;;  %v2011_v34 = vld [vmem:[%s2583_s2 + $0x128] sm:$0xff]   ;;  %v2014_v43 = vld [vmem:[%s2585_s1 + $0x20] sm:$0xff]   ;;  %v2015_v44 = vld [vmem:[%s2583_s2 + $0x130] sm:$0xff]  }
  0x13   :  { %2065 = vrcp.f32 %v199_v50  ;;  %v2017_v47 = vld [vmem:[%s2583_s2 + $0x178] sm:$0xff]   ;;  %v2016_v48 = vld [vmem:[%s2585_s1 + $0x68] sm:$0xff]  }
  0x14   :  { %1735 = vmatpush3.bf16.msra.mxu0 %v1977_v18  ;;  %2067 = vrcp.f32 %v203_v52  ;;  %v2003_v18 = vld [vmem:[%s2583_s2 + $0x118] sm:$0xff]   ;;  %v2018_v50 = vld [vmem:[%s2585_s1 + $0x28] sm:$0xff]  }
  0x15   :  { %1757 = vmatpush3.bf16.msra.mxu1 %v1978_v19  ;;  %1736 = vmatprep.subr.bf16.mxu0 %v1979_v20  ;;  %2069 = vtanh.f32 %v53_v4  ;;  %v2329_v19 = vunpack.c.l.bf16 %v41_v16  ;;  %v2331_v20 = vunpack.c.h.bf16 %v41_v16  ;;  %v2019_v52 = vld [vmem:[%s2583_s2 + $0x138] sm:$0xff]  }
  0x16   :  { %1758 = vmatprep.subr.bf16.mxu1 %v1980_v21  ;;  %v2005_v21 = vld [vmem:[%s2583_s2 + $0x160] sm:$0xff]   ;;  %2071 = vtanh.f32 %v50_v17  ;;  %v2025_v4 = vld [vmem:[%s2585_s1 + $0x38] sm:$0xff]  }
  0x17   :  { %v54_v16 = vmul.f32 0.5, %v2329_v19  ;;  %v2035_v17 = vld [vmem:[%s2585_s1 + $0x98] sm:$0xff]  }
  0x18   :  { %1737 = vmatpush3.bf16.msra.mxu0 %v1981_v22  ;;  %v2058_v53 = vpop.eup %2057  ;;  %v2004_v22 = vld [vmem:[%s2585_s1 + $0x50] sm:$0xff]  }
  0x19   :  { %1759 = vmatpush3.bf16.msra.mxu1 %v1982_v23  ;;  %1738 = vmatprep.subr.bf16.mxu0 %v1983_v24  ;;  %v65_v55 = vadd.f32 1.0, %v2058_v53  ;;  %v195_v23 = vmul.f32 %v2331_v20, %v2331_v20  ;;  %v194_v24 = vmul.f32 %v2329_v19, %v2329_v19 }
  0x1a   :  { %1760 = vmatprep.subr.bf16.mxu1 %v1984_v25  ;;  %v2060_v54 = vpop.eup %2059  ;;  %v55_v25 = vmul.f32 0.5, %v2331_v20 }
  0x1b   :  { %v2062_v56 = vpop.eup %2061  ;;  %v212_v57 = vpack.c.bf16 %v2060_v54, %v2060_v54  ;;  %v72_v3 = vmul.f32 0.5, %v65_v55 }
  0x1c   :  { %1739 = vmatpush3.bf16.msra.mxu0 %v1985_v26  ;;  %v2064_v59 = vpop.eup %2063  ;;  %v214_v60 = vpack.c.bf16 %v2062_v56, %v2062_v56  ;;  %v2006_v26 = vld [vmem:[%s2585_s1 + $0x10] sm:$0xff]   ;;  %2073 = vtanh.f32 %v55_v25  ;;  %v2040_v25 = vld [vmem:[%s2585_s1 + $0x158] sm:$0xff]  }
  0x1d   :  { %1761 = vmatpush3.bf16.msra.mxu1 %v1986_v27  ;;  %1740 = vmatprep.subr.bf16.mxu0 %v1987_v28  ;;  %v2066_v62 = vpop.eup %2065  ;;  %v211_v63 = vpack.c.bf16 %v2064_v59, %v2064_v59  ;;  %v79_v8 = vmul.f32 %v72_v3, %v44_v36  ;;  %v2007_v27 = vld [vmem:[%s2583_s2 + $0x120] sm:$0xff]   ;;  %v2009_v28 = vld [vmem:[%s2583_s2 + $0x168] sm:$0xff]  }
  0x1e   :  { %1762 = vmatprep.subr.bf16.mxu1 %v1988_v29  ;;  %646 = vmatprep.mubr.bf16.mxu0 %v212_v57  ;;  %v213_v1 = vpack.c.bf16 %v2066_v62, %v2066_v62  ;;  %v2068_v6 = vpop.eup %2067  ;;  %v202_v29 = vadd.f32 1.0, %v195_v23  ;;  %v2022_v57 = vld [vmem:[%s2585_s1 + $0xc0] sm:$0xff]   ;;  %v2038_v23 = vld [vmem:[%s2585_s1 + $0x110] sm:$0xff]  }
  0x1f   :  { %686 = vmatprep.mubr.bf16.mxu1 %v214_v60  ;;  %v217_v10 = vpack.c.bf16 %v2068_v6, %v2068_v6  ;;  %v86_v14 = vpack.c.bf16 %v79_v8, %v79_v8  ;;  %v2028_v8 = vld [vmem:[%s2585_s1 + $0x140] sm:$0xff]  }
  0x20   :  { %1741 = vmatpush3.bf16.msra.mxu0 %v1989_v30  ;;  %v201_v30 = vadd.f32 1.0, %v194_v24  ;;  %2075 = vrcp.f32 %v202_v29  ;;  %v2041_v24 = vld [vmem:[%s2585_s1 + $0xe8] sm:$0xff]   ;;  %v2042_v29 = vld [vmem:[%s2585_s1 + $0x118] sm:$0xff]  }
  0x21   :  { %1763 = vmatpush3.bf16.msra.mxu1 %v1990_v31  ;;  %1770 = vmatprep.subr.bf16.mxu0 %v1991_v38  ;;  %v2070_v31 = vpop.eup %2069  ;;  %v2013_v38 = vld [vmem:[%s2583_s2 + $0x170] sm:$0xff]  }
  0x22   :  { %1878 = vmatprep.subr.bf16.mxu1 %v2097_v41  ;;  %2077 = vrcp.f32 %v201_v30  ;;  %v67_v36 = vadd.f32 1.0, %v2070_v31  ;;  %v2072_v46 = vpop.eup %2071  ;;  %v2045_v30 = vld [vmem:[%s2585_s1 + $0xf0] sm:$0xff]   ;;  %v2044_v31 = vld [vmem:[%s2585_s1 + $0x160] sm:$0xff]  }
  0x23   :  { %647 = vmatmul.mubr.bf16.vlgmr.msra.gmra.mrb[0].mxu0 %v211_v63  ;;  %v64_v53 = vadd.f32 1.0, %v2072_v46  ;;  %v2050_v46 = vld [vmem:[%s2585_s1 + $0x128] sm:$0xff]  }
  0x24   :  { %687 = vmatmul.mubr.bf16.vlgmr.msra.gmra.mrb[0].mxu1 %v213_v1  ;;  %1771 = vmatpush3.bf16.msra.mxu0 %v1992_v58  ;;  %v74_v45 = vmul.f32 0.5, %v67_v36  ;;  %v2020_v58 = vld [vmem:[%s2585_s1 + $0x70] sm:$0xff]   ;;  %v52_v1 = vmul.f32 0.5, %v2267_v37  ;;  %v2046_v36 = vld [vmem:[%s2585_s1 + $0x120] sm:$0xff]  }
  0x25   :  { %1879 = vmatpush3.bf16.msra.mxu1 %v1993_v61  ;;  %1772 = vmatprep.subr.bf16.mxu0 %v1994_v0  ;;  %v2023_v61 = vld [vmem:[%s2585_s1 + $0x80] sm:$0xff]   ;;  %v71_v62 = vmul.f32 0.5, %v64_v53  ;;  %v2026_v0 = vld [vmem:[%s2585_s1 + $0xc8] sm:$0xff]  }
  0x26   :  { %1880 = vmatprep.mubr.msk.bf16.mxu1 %vm2098_vm0, %v2097_v41  ;;  %1794 = vmatprep.subr.bf16.mxu1 %v1996_v2  ;;  %v2074_v49 = vpop.eup %2073  ;;  %v81_v54 = vmul.f32 %v74_v45, %v2274_v40  ;;  %v2021_v40 = vld [vmem:[%s2585_s1 + $0x30] sm:$0xff]   ;;  %v2024_v2 = vld [vmem:[%s2585_s1 + $0x78] sm:$0xff]   ;;  %2079 = vtanh.f32 %v52_v1 }
  0x27   :  { %v69_v59 = vadd.f32 1.0, %v2074_v49  ;;  %v78_v6 = vmul.f32 %v71_v62, %v2265_v35  ;;  %2081 = vtanh.f32 %v54_v16 }
  0x28   :  { %1773 = vmatpush3.bf16.msra.mxu0 %v1995_v5  ;;  %v88_v63 = vpack.c.bf16 %v81_v54, %v81_v54  ;;  %v2027_v5 = vld [vmem:[%s2585_s1 + $0x88] sm:$0xff]   ;;  %v2055_v54 = vld [vmem:[%s2585_s1 + $0x138] sm:$0xff]  }
  0x29   :  { %1774 = vmatprep.subr.bf16.mxu0 %v1997_v7  ;;  %v76_v3 = vmul.f32 0.5, %v69_v59  ;;  %v2029_v7 = vld [vmem:[%s2585_s1 + $0xd0] sm:$0xff]   ;;  %v85_v35 = vpack.c.bf16 %v78_v6, %v78_v6 }
  0x2a   :  { %v2076_v51 = vpop.eup %2075 }
  0x2b   :  { %v216_v56 = vpack.c.bf16 %v2076_v51, %v2076_v51  ;;  %v2054_v51 = vld [vmem:[%s2585_s1 + $0x178] sm:$0xff]  }
  0x2c   :  { %1881 = vmatmul.mubr.msk.bf16.vlgmr.msra.gmra.mrb[4].mxu1 %vm610_vm1, %v217_v10  ;;  %1775 = vmatpush3.bf16.msra.mxu0 %v1999_v11  ;;  %v2078_v55 = vpop.eup %2077  ;;  %v2030_v10 = vld [vmem:[%s2585_s1 + $0x100] sm:$0xff]   ;;  %v2031_v11 = vld [vmem:[%s2585_s1 + $0x90] sm:$0xff]  }
  0x2d   :  { %1795 = vmatpush3.bf16.msra.mxu1 %v1998_v9  ;;  %1776 = vmatprep.subr.bf16.mxu0 %v2001_v12  ;;  %v215_v60 = vpack.c.bf16 %v2078_v55, %v2078_v55  ;;  %v83_v9 = vmul.f32 %v76_v3, %v2331_v20  ;;  %v2033_v12 = vld [vmem:[%s2585_s1 + $0xd8] sm:$0xff]   ;;  %v2036_v20 = vld [vmem:[%s2585_s1 + $0x150] sm:$0xff]  }
  0x2e   :  { %1796 = vmatprep.subr.bf16.mxu1 %v2000_v13  ;;  %1103 = vmatprep.mubr.bf16.mxu1 %v86_v14  ;;  %v2032_v13 = vld [vmem:[%s2585_s1 + $0x148] sm:$0xff]  }
  0x2f   :  { %726 = vmatprep.mubr.bf16.mxu0 %v216_v56  ;;  %v90_v14 = vpack.c.bf16 %v83_v9, %v83_v9 }
  0x30   :  { %1777 = vmatpush3.bf16.msra.mxu0 %v2003_v18  ;;  %v2037_v18 = vld [vmem:[%s2585_s1 + $0xe0] sm:$0xff]  }
  0x31   :  { %1797 = vmatpush3.bf16.msra.mxu1 %v2002_v15  ;;  %1778 = vmatprep.subr.bf16.mxu0 %v2005_v21  ;;  %v2034_v15 = vld [vmem:[%s2585_s1 + $0x108] sm:$0xff]   ;;  %v2080_v21 = vpop.eup %2079 }
  0x32   :  { %1798 = vmatprep.subr.bf16.mxu1 %v2004_v22  ;;  %v2039_v22 = vld [vmem:[%s2585_s1 + $0xa0] sm:$0xff]  }
  0x34   :  { %1779 = vmatpush3.bf16.msra.mxu0 %v2007_v27  ;;  %v56_v27 = vmul.f32 0.5, %v2272_v39 }
  0x35   :  { %1799 = vmatpush3.bf16.msra.mxu1 %v2006_v26  ;;  %1780 = vmatprep.subr.bf16.mxu0 %v2009_v28  ;;  %v66_v26 = vadd.f32 1.0, %v2080_v21  ;;  %v2043_v28 = vld [vmem:[%s2585_s1 + $0xa8] sm:$0xff]  }
  0x36   :  { %1800 = vmatprep.subr.bf16.mxu1 %v2008_v32  ;;  %2083 = vtanh.f32 %v56_v27 }
  0x37   :  { %v73_v32 = vmul.f32 0.5, %v66_v26 }
  0x38   :  { %1781 = vmatpush3.bf16.msra.mxu0 %v2011_v34  ;;  %v2082_v34 = vpop.eup %2081 }
  0x39   :  { %1801 = vmatpush3.bf16.msra.mxu1 %v2010_v33  ;;  %1782 = vmatprep.subr.bf16.mxu0 %v2013_v38  ;;  %v2047_v33 = vld [vmem:[%s2585_s1 + $0xb0] sm:$0xff]   ;;  %v2049_v38 = vld [vmem:[%s2585_s1 + $0xf8] sm:$0xff]   ;;  %v68_v45 = vadd.f32 1.0, %v2082_v34 }
  0x3a   :  { %1802 = vmatprep.subr.bf16.mxu1 %v2012_v42  ;;  %v2048_v42 = vld [vmem:[%s2585_s1 + $0x168] sm:$0xff]  }
  0x3c   :  { %1783 = vmatpush3.bf16.msra.mxu0 %v2015_v44  ;;  %v2051_v44 = vld [vmem:[%s2585_s1 + $0xb8] sm:$0xff]  }
  0x3d   :  { %1803 = vmatpush3.bf16.msra.mxu1 %v2014_v43  ;;  %1784 = vmatprep.subr.bf16.mxu0 %v2017_v47  ;;  %v80_v43 = vmul.f32 %v73_v32, %v2267_v37  ;;  %v2052_v47 = vld [vmem:[%s2585_s1 + $0x170] sm:$0xff]   ;;  %v75_v37 = vmul.f32 0.5, %v68_v45  ;;  %v1274_v45 = vld [vmem:[%s2586_s6] sm:$0xff] }
  0x3e   :  { %1804 = vmatprep.subr.bf16.mxu1 %v2016_v48 }
  0x3f   :  { %v87_v48 = vpack.c.bf16 %v80_v43, %v80_v43 }
  0x40   :  { %1785 = vmatpush3.bf16.msra.mxu0 %v2019_v52  ;;  %v2084_v49 = vpop.eup %2083  ;;  %v82_v52 = vmul.f32 %v75_v37, %v2329_v19  ;;  %v1277_v37 = vld [vmem:[%s2586_s6 + $0x18] sm:$0xff] }
  0x41   :  { %1805 = vmatpush3.bf16.msra.mxu1 %v2018_v50  ;;  %1816 = vmatprep.subr.bf16.mxu0 %v2022_v57  ;;  %v2053_v50 = vld [vmem:[%s2585_s1 + $0x130] sm:$0xff]   ;;  %v70_v53 = vadd.f32 1.0, %v2084_v49  ;;  %v2056_v57 = vld [vmem:[%s2585_s1 + $0x180] sm:$0xff]  }
  0x42   :  { %1806 = vmatprep.subr.bf16.mxu1 %v2020_v58  ;;  %v89_v55 = vpack.c.bf16 %v82_v52, %v82_v52 }
  0x43   :  { %727 = vmatmul.mubr.bf16.vlgmr.msra.gmra.mrb[4].mxu0 %v215_v60  ;;  %v77_v56 = vmul.f32 0.5, %v70_v53 }
  0x44   :  { %1817 = vmatpush3.bf16.msra.mxu0 %v2023_v61  ;;  %1143 = vmatprep.mubr.bf16.mxu0 %v88_v63 }
  0x45   :  { %1807 = vmatpush3.bf16.msra.mxu1 %v2021_v40  ;;  %1818 = vmatprep.subr.bf16.mxu0 %v2026_v0  ;;  %v84_v19 = vmul.f32 %v77_v56, %v2272_v39  ;;  %v1719_v56 = vld [vmem:[%s2588_s4] ss:$0 sm:$0xff] }
  0x46   :  { %1808 = vmatprep.subr.bf16.mxu1 %v2024_v2 }
  0x47   :  { %v91_v58 = vpack.c.bf16 %v84_v19, %v84_v19 }
  0x48   :  { %1819 = vmatpush3.bf16.msra.mxu0 %v2027_v5 }
  0x49   :  { %1809 = vmatpush3.bf16.msra.mxu1 %v2025_v4  ;;  %1820 = vmatprep.subr.bf16.mxu0 %v2029_v7 }
  0x4a   :  { %1838 = vmatprep.subr.bf16.mxu1 %v2028_v8 }
  0x4c   :  { %1104 = vmatmul.mubr.bf16.vlgmr.msra.gmra.mrb[8].mxu1 %v85_v35  ;;  %1821 = vmatpush3.bf16.msra.mxu0 %v2031_v11 }
  0x4d   :  { %1839 = vmatpush3.bf16.msra.mxu1 %v2030_v10  ;;  %1822 = vmatprep.subr.bf16.mxu0 %v2033_v12 }
  0x4e   :  { %1840 = vmatprep.subr.bf16.mxu1 %v2032_v13  ;;  %1183 = vmatprep.mubr.bf16.mxu1 %v90_v14 }
  0x50   :  { %1823 = vmatpush3.bf16.msra.mxu0 %v2035_v17 }
  0x51   :  { %1841 = vmatpush3.bf16.msra.mxu1 %v2034_v15  ;;  %1824 = vmatprep.subr.bf16.mxu0 %v2037_v18 }
  0x52   :  { %1842 = vmatprep.subr.bf16.mxu1 %v2036_v20 }
  0x54   :  { %1825 = vmatpush3.bf16.msra.mxu0 %v2039_v22 }
  0x55   :  { %1843 = vmatpush3.bf16.msra.mxu1 %v2038_v23  ;;  %1826 = vmatprep.subr.bf16.mxu0 %v2041_v24 }
  0x56   :  { %1844 = vmatprep.subr.bf16.mxu1 %v2040_v25 }
  0x58   :  { %1827 = vmatpush3.bf16.msra.mxu0 %v2043_v28 }
  0x59   :  { %1845 = vmatpush3.bf16.msra.mxu1 %v2042_v29  ;;  %1828 = vmatprep.subr.bf16.mxu0 %v2045_v30 }
  0x5a   :  { %1846 = vmatprep.subr.bf16.mxu1 %v2044_v31 }
  0x5c   :  { %1829 = vmatpush3.bf16.msra.mxu0 %v2047_v33 }
  0x5d   :  { %1847 = vmatpush3.bf16.msra.mxu1 %v2046_v36  ;;  %1830 = vmatprep.subr.bf16.mxu0 %v2049_v38 }
  0x5e   :  { %1848 = vmatprep.subr.bf16.mxu1 %v2048_v42 }
  0x60   :  { %1831 = vmatpush3.bf16.msra.mxu0 %v2051_v44  ;;  %v2099_v44 = vmov 0.0|0.0  }
  0x61   :  { %1849 = vmatpush3.bf16.msra.mxu1 %v2050_v46  ;;  %1926 = vmatprep.subr.bf16.mxu0 %v2099_v44  ;;  %v1275_v46 = vld [vmem:[%s2586_s6 + $0x8] sm:$0xff] }
  0x62   :  { %1850 = vmatprep.subr.bf16.mxu1 %v2052_v47  ;;  %v1276_v47 = vld [vmem:[%s2586_s6 + $0x10] sm:$0xff] }
  0x63   :  { %1144 = vmatmul.mubr.bf16.vlgmr.msra.gmra.mrb[8].mxu0 %v87_v48  ;;  %v1927_v48 = vpack.c.bf16 %v1275_v46, %v1274_v45  ;;  %v1930_v49 = vpack.c.bf16 %v1277_v37, %v1276_v47 }
  0x64   :  { %1898 = vmatprep.mubr.msk.f32.mxu0 %vm2098_vm0, %v2097_v41 }
  0x65   :  { %1851 = vmatpush3.bf16.msra.mxu1 %v2053_v50  ;;  %1928 = vmatpush3.bf16.msra.mxu0 %v1927_v48 }
  0x66   :  { %1852 = vmatprep.subr.bf16.mxu1 %v2054_v51  ;;  %1929 = vmatprep.subr.bf16.mxu0 %v2099_v44 }
  0x69   :  { %1853 = vmatpush3.bf16.msra.mxu1 %v2055_v54  ;;  %1931 = vmatpush3.bf16.msra.mxu0 %v1930_v49  ;;  %v1718_v54 = vld [vmem:[%s2587_s3] ss:$0 sm:$0xff] }
  0x6a   :  { %1884 = vmatprep.subr.bf16.mxu1 %v2097_v41  ;;  %1932 = vmatprep.subr.bf16.mxu0 %v2099_v44 }
  0x6c   :  { %1184 = vmatmul.mubr.bf16.vlgmr.msra.gmra.mrb[12].mxu1 %v89_v55 }
  0x6d   :  { %1885 = vmatpush3.bf16.msra.mxu1 %v2056_v57  ;;  %1886 = vmatprep.mubr.msk.bf16.mxu1 %vm2098_vm0, %v2097_v41 }
  0x74   :  { %1887 = vmatmul.mubr.msk.bf16.vlgmr.msra.gmra.mrb[4].mxu1 %vm610_vm1, %v91_v58 }
  0xf6   :  { %v1742_v59 = vpop.f32.mrb[0].mxu0 }
  0xf7   :  { %v1764_v60 = vpop.f32.mrb[0].mxu1  ;;  %v1743_v40 = vpop.f32.mrb[1].mxu0 }
  0xf8   :  { %v1744_v61 = vadd.f32 %v1743_v40, %v1742_v59  ;;  %v1765_v62 = vpop.f32.mrb[1].mxu1  ;;  %v1745_v63 = vpop.f32.mrb[2].mxu0  ;;  %v1267_v40 = vld [vmem:[%s2589_s5] sm:$0xff] }
  0xf9   :  { %v1766_v0 = vadd.f32 %v1765_v62, %v1764_v60  ;;  %v1767_v1 = vpop.f32.mrb[2].mxu1  ;;  %v1746_v2 = vpop.f32.mrb[3].mxu0 }
  0xfa   :  { %v1768_v3 = vpop.f32.mrb[3].mxu1  ;;  %v1270_v1 = vld [vmem:[%s2589_s5 + $0x18] sm:$0xff] }
  0xfb   :  { %v689_v4 = vadd.f32 %v1766_v0, %v1744_v61  ;;  %v1268_v61 = vld [vmem:[%s2589_s5 + $0x8] sm:$0xff]  ;;  %v1269_v0 = vld [vmem:[%s2589_s5 + $0x10] sm:$0xff] }
  0xfc   :  { %v1933_v63 = vpack.c.bf16 %v1268_v61, %v1267_v40 }
 0x116   :  { %v1786_v5 = vpop.f32.mrb[4].mxu0 }
 0x117   :  { %v1787_v39 = vpop.f32.mrb[5].mxu0 }
 0x118   :  { %v1788_v6 = vadd.f32 %v1787_v39, %v1786_v5  ;;  %v1789_v7 = vpop.f32.mrb[6].mxu0 }
 0x119   :  { %v1790_v8 = vpop.f32.mrb[7].mxu0 }
 0x11a   :  { %v729_v9 = vadd.f32 %v1788_v6, %v689_v4  ;;  %v1936_v4 = vpack.c.bf16 %v1270_v1, %v1269_v0 }
 0x11f   :  { %v1810_v10 = vpop.f32.mrb[8].mxu1 }
 0x120   :  { %v1811_v35 = vpop.f32.mrb[9].mxu1 }
 0x121   :  { %v1812_v11 = vadd.f32 %v1811_v35, %v1810_v10  ;;  %v1813_v12 = vpop.f32.mrb[10].mxu1 }
 0x122   :  { %v1814_v13 = vpop.f32.mrb[11].mxu1 }
 0x123   :  { %v1944_v14 = vadd.f32 %v1812_v11, %v729_v9  ;;  %v1464_v13 = vld [vmem:[%s2590_s10] sm:$0xff] }
 0x136   :  { %v1832_v15 = vpop.f32.mrb[8].mxu0 }
 0x137   :  { %v1833_v16 = vpop.f32.mrb[9].mxu0 }
 0x138   :  { %v1834_v17 = vadd.f32 %v1833_v16, %v1832_v15  ;;  %v1835_v18 = vpop.f32.mrb[10].mxu0 }
 0x139   :  { %v1836_v20 = vpop.f32.mrb[11].mxu0 }
 0x13a   :  { %v1945_v21 = vadd.f32 %v1944_v14, %v1834_v17  ;;  %v1465_v14 = vld [vmem:[%s2590_s10 + $0x8] sm:$0xff] }
 0x13b   :  { %v1939_v15 = vpack.c.bf16 %v1465_v14, %v1464_v13 }
 0x13f   :  { %v1854_v22 = vpop.f32.mrb[12].mxu1 }
 0x140   :  { %v1855_v23 = vpop.f32.mrb[13].mxu1 }
 0x141   :  { %v1856_v24 = vadd.f32 %v1855_v23, %v1854_v22  ;;  %v1857_v25 = vpop.f32.mrb[14].mxu1  ;;  %v1723_v23 = vld [vmem:[%s2592_s8] ss:$0 sm:$0xff] }
 0x142   :  { %v1858_v26 = vpop.f32.mrb[15].mxu1 }
 0x143   :  { %v1946_v27 = vadd.f32 %v1945_v21, %v1856_v24  ;;  %v1722_v21 = vld [vmem:[%s2591_s7] ss:$0 sm:$0xff] }
 0x147   :  { %v1225_v28 = vpop.f32.mrb[4].mxu1 }
 0x148   :  { %v1947_v29 = vadd.f32 %v1946_v27, %v1225_v28  ;;  %v1888_v30 = vpop.f32.mrb[5].mxu1 }
 0x149   :  { %v1228_v31 = vpop.f32.mrb[6].mxu1  ;;  %v1460_v30 = vld [vmem:[%s2593_s9 + $0x8] sm:$0xff] }
 0x14a   :  { %v1889_v32 = vpop.f32.mrb[7].mxu1  ;;  %v1234_v33 = vsel %vm1233_vm2, %v1947_v29, 0.0 }
 0x14b   :  { %1235 = vadd.xlane.f32.xlu0 %v1234_v33 }
 0x1d8   :  { %v1236_v34 = vpop.xlane.xlu0 %1235 }
 0x1d9   :  { %v1238_v36 = vmul.f32 0.03125, %v1236_v34 }
 0x1db   :  { %v1239_v38 = vsub.f32 %v1947_v29, %v1238_v36  ;;  %v1459_v29 = vld [vmem:[%s2593_s9] sm:$0xff] }
 0x1dc   :  { %v1942_v32 = vpack.c.bf16 %v1460_v30, %v1459_v29 }
 0x1dd   :  { %v1240_v42 = vmul.f32 %v1239_v38, %v1239_v38 }
 0x1df   :  { %v1241_v43 = vsel %vm1233_vm2, %v1240_v42, 0.0 }
 0x1e0   :  { %1242 = vadd.xlane.f32.xlu0 %v1241_v43 }
 0x26d   :  { %v1243_v50 = vpop.xlane.xlu0 %1242 }
 0x26e   :  { %v1244_v51 = vmul.f32 0.03125, %v1243_v50 }
 0x270   :  { %v1245_v52 = vadd.f32 1e-05, %v1244_v51 }
 0x272   :  { %2085 = vrsqrt.f32 %v1245_v52 }
 0x27c   :  { %v2086_v53 = vpop.eup %2085 }
 0x27d   :  { %v1247_v55 = vmul.f32 %v2086_v53, %v1239_v38 }
 0x27f   :  { %v1254_v57 = vmul.f32 %v1718_v54, %v1247_v55 }
 0x281   :  { %v1261_v19 = vadd.f32 %v1719_v56, %v1254_v57 }
 0x283   :  { %v1271_v58 = vmul.f32 %v1261_v19, %v1261_v19  ;;  %v1262_v59 = vmul.f32 0.5, %v1261_v19 }
 0x285   :  { %v1272_v60 = vadd.f32 1.0, %v1271_v58  ;;  %2087 = vtanh.f32 %v1262_v59 }
 0x287   :  { %2089 = vrcp.f32 %v1272_v60 }
 0x28f   :  { %v2088_v62 = vpop.eup %2087 }
 0x290   :  { %v1264_v2 = vadd.f32 1.0, %v2088_v62 }
 0x291   :  { %v2090_v3 = vpop.eup %2089 }
 0x292   :  { %1899 = vmatmul.mubr.msk.f32.vlgmr.msra.gmra.mrb[12].mxu0 %vm1233_vm2, %v2090_v3  ;;  %v1265_v5 = vmul.f32 0.5, %v1264_v2 }
 0x293   :  { %1934 = vmatpush3.bf16.msra.mxu0 %v1933_v63  ;;  %1909 = vmatprep.mubr.msk.f32.mxu0 %vm2098_vm0, %v2097_v41 }
 0x294   :  { %1935 = vmatprep.subr.bf16.mxu0 %v2099_v44  ;;  %v1266_v39 = vmul.f32 %v1265_v5, %v1261_v19 }
 0x297   :  { %1937 = vmatpush3.bf16.msra.mxu0 %v1936_v4 }
 0x298   :  { %1938 = vmatprep.subr.bf16.mxu0 %v2099_v44 }
 0x29a   :  { %1910 = vmatmul.mubr.msk.f32.vlgmr.msra.gmra.mrb[12].mxu0 %vm1233_vm2, %v1266_v39 }
 0x29b   :  { %1916 = vmatprep.mubr.msk.f32.mxu0 %vm2098_vm0, %v2097_v41  ;;  %1940 = vmatpush3.bf16.msra.mxu0 %v1939_v15 }
 0x29c   :  { %1941 = vmatprep.subr.bf16.mxu0 %v2099_v44 }
 0x36d   :  { %v1420_v6 = vpop.f32.mrb[12].mxu0 }
 0x36e   :  { %v1911_v7 = vpop.f32.mrb[13].mxu0  ;;  %v1426_v8 = vsel %vm610_vm1, %v1420_v6, 0.0 }
 0x36f   :  { %1427 = vadd.xlane.f32.xlu1 %v1426_v8 }
 0x3fc   :  { %v1428_v9 = vpop.xlane.xlu1 %1427 }
 0x3fd   :  { %v1430_v10 = vmul.f32 0.0625, %v1428_v9 }
 0x3ff   :  { %v1431_v35 = vsub.f32 %v1420_v6, %v1430_v10 }
 0x401   :  { %v1432_v11 = vmul.f32 %v1431_v35, %v1431_v35 }
 0x403   :  { %v1433_v12 = vsel %vm610_vm1, %v1432_v11, 0.0 }
 0x404   :  { %1434 = vadd.xlane.f32.xlu1 %v1433_v12 }
 0x491   :  { %v1435_v16 = vpop.xlane.xlu1 %1434 }
 0x492   :  { %v1436_v17 = vmul.f32 0.0625, %v1435_v16 }
 0x494   :  { %v1437_v18 = vadd.f32 1e-05, %v1436_v17 }
 0x496   :  { %2091 = vrsqrt.f32 %v1437_v18 }
 0x4a0   :  { %v2092_v20 = vpop.eup %2091 }
 0x4a1   :  { %v1439_v22 = vmul.f32 %v2092_v20, %v1431_v35 }
 0x4a3   :  { %v1446_v24 = vmul.f32 %v1722_v21, %v1439_v22 }
 0x4a5   :  { %v1453_v25 = vadd.f32 %v1723_v23, %v1446_v24 }
 0x4a7   :  { %v1461_v26 = vmul.f32 %v1453_v25, %v1453_v25  ;;  %v1454_v27 = vmul.f32 0.5, %v1453_v25 }
 0x4a9   :  { %v1462_v28 = vadd.f32 1.0, %v1461_v26  ;;  %2093 = vtanh.f32 %v1454_v27 }
 0x4ab   :  { %2095 = vrcp.f32 %v1462_v28 }
 0x4b3   :  { %v2094_v31 = vpop.eup %2093 }
 0x4b4   :  { %v1456_v33 = vadd.f32 1.0, %v2094_v31 }
 0x4b5   :  { %v2096_v34 = vpop.eup %2095 }
 0x4b6   :  { %1917 = vmatmul.mubr.msk.f32.vlgmr.msra.gmra.mrb[14].mxu0 %vm610_vm1, %v2096_v34  ;;  %v1457_v36 = vmul.f32 0.5, %v1456_v33 }
 0x4b7   :  { %1943 = vmatpush3.bf16.msra.mxu0 %v1942_v32  ;;  %1923 = vmatprep.mubr.msk.f32.mxu0 %vm2098_vm0, %v2097_v41 }
 0x4b8   :  { %v1458_v38 = vmul.f32 %v1457_v36, %v1453_v25 }
 0x4be   :  { %1924 = vmatmul.mubr.msk.f32.vlgmr.msra.gmra.mrb[14].mxu0 %vm610_vm1, %v1458_v38 }
 0x591   :  { %v1608_v42 = vpop.f32.mrb[14].mxu0 }
 0x592   :  { %v1612_v43 = vpack.c.bf16 %v1608_v42, %v1608_v42  ;;  %v1925_v44 = vpop.f32.mrb[15].mxu0 }
 0x594   :  { %1613 = vst [vmem:[%s2594_s11] sm:$0xf] %v1612_v43 }

</bundles_post_ra>
